<compile_context>
chip_gen: v6e
topology: v6e:2x2x1
jax: 0.10.0
libtpu: 0.0.40
codegen_flags: <defaults>
</compile_context>

<pallas_src>
import functools

import jax
import jax.numpy as jnp
from jax.experimental import pallas as pl
from jax.experimental.pallas import tpu as pltpu


def _round_up(a, b):
    return (a + b - 1) // b * b


def _cdiv(a, b):
    return (a + b - 1) // b


# Per-input block budget (actual dtype bytes, per pipeline buffer):
# 2 inputs x 2 buffers x 8 MiB = 32 MiB of pipeline VMEM.
_BLOCK_BUDGET = 8 * 1024 * 1024
# Budget for each f32 temporary inside the inner fold loop (x, t, diff, sq).
_CHUNK_F32_BUDGET = 1 * 1024 * 1024
# Scoped-VMEM limit: 32 MiB pipeline + ~5 MiB temps + slack.
# Safe on v5e/v6e (128 MiB physical) and v7x (64 MiB physical).
_VMEM_LIMIT = 48 * 1024 * 1024


def _wmse_partial_kernel(x_ref, t_ref, o_ref, *, m_total, tile_m, chunk, need_mask):
    """Accumulate sum over rows of (x - t)^2 into an (8, td) f32 partial.

    Row groups of 8 map exactly onto vreg tiles, so the fold is pure
    elementwise VPU adds (no cross-lane XLU reduce, no SMEM scalars).
    """
    td = x_ref.shape[1]
    n_chunks = tile_m // chunk
    row0 = pl.program_id(0) * tile_m
    if need_mask:
        # Hoisted outside the loop; per-chunk cost is one compare + one select.
        row_iota = jax.lax.broadcasted_iota(jnp.int32, (chunk, td), 0)

    def body(c, acc):
        start = pl.multiple_of(c * chunk, chunk)
        x = x_ref[pl.ds(start, chunk), :].astype(jnp.float32)
        t = t_ref[pl.ds(start, chunk), :].astype(jnp.float32)
        d = x - t
        sq = d * d
        if need_mask:
            # Rows past the (un-padded) M hold garbage from the edge block:
            # select zero for them instead of padding the inputs in HBM.
            rows_left = m_total - (row0 + start)
            sq = jnp.where(row_iota < rows_left, sq, 0.0)
        # Split the sublane axis on its native 8-boundary -> elementwise adds.
        return acc + sq.reshape(chunk // 8, 8, td).sum(axis=0)

    acc = jax.lax.fori_loop(0, n_chunks, body, jnp.zeros((8, td), jnp.float32))
    o_ref[...] = acc  # lane-dense (8, td) partial, one block per grid step


def weighted_mse_loss_2d(x2d, t2d, w, *, max_lane_block=None):
    """x2d, t2d: (M, D).  w: per-feature weights (length D or 1).  Returns scalar."""
    M, D = x2d.shape
    assert t2d.shape == (M, D), (x2d.shape, t2d.shape)

    w = jnp.asarray(w, jnp.float32).reshape(-1)
    if w.shape[0] == 1 and D != 1:
        w = jnp.broadcast_to(w, (D,))
    assert w.shape[0] == D, (w.shape, D)

    itemsize = max(jnp.dtype(x2d.dtype).itemsize, jnp.dtype(t2d.dtype).itemsize)

    # ---- feature (lane) block: usually the full, un-padded D ----------------
    # Only an extremely wide D gets tiled (multiples of 128; the ragged tail is
    # handled by masked edge-block reads/writes, garbage columns never land).
    lane_cap = max(128, min(_BLOCK_BUDGET // (8 * itemsize),
                            _CHUNK_F32_BUDGET // (8 * 4)) // 128 * 128)
    if max_lane_block is not None:
        lane_cap = max(128, min(lane_cap, max_lane_block // 128 * 128))
    if D <= lane_cap:
        td, n_d = D, 1
    else:
        td = lane_cap
        n_d = _cdiv(D, td)

    # ---- row (sublane) block: byte-budgeted, not a fixed row count ----------
    rows_cover = _round_up(M, 8)
    max_rows = max(8, (_BLOCK_BUDGET // (td * itemsize)) // 8 * 8)
    tm = min(max_rows, rows_cover)
    # v7x: make sure the "parallel" grid has >= 2 steps so both TensorCores
    # get work (harmless on single-core v5e/v6e).
    if n_d == 1 and rows_cover >= 16:
        tm = min(tm, _round_up(_cdiv(rows_cover, 2), 8))
    # Inner fold chunk bounds the f32 temporaries (big blocks, small temps).
    chunk = max(8, min(tm, (_CHUNK_F32_BUDGET // (td * 4)) // 8 * 8))
    tm = max(chunk, (tm // chunk) * chunk)  # tile_m is a whole number of chunks

    n_m = _cdiv(M, tm)
    need_mask = (M % tm) != 0
    n_total = M * D  # PyTorch .mean() divides by the broadcast (input) size

    kernel = functools.partial(
        _wmse_partial_kernel, m_total=M, tile_m=tm, chunk=chunk, need_mask=need_mask
    )

    partials = pl.pallas_call(
        kernel,
        out_shape=jax.ShapeDtypeStruct((n_m * 8, D), jnp.float32),
        grid_spec=pltpu.PrefetchScalarGridSpec(
            num_scalar_prefetch=0,
            grid=(n_m, n_d),
            in_specs=[
                pl.BlockSpec((tm, td), lambda i, j: (i, j)),   # input tile
                pl.BlockSpec((tm, td), lambda i, j: (i, j)),   # target tile
            ],
            # Each grid step owns its own (8, td) partial-sum block: no carried
            # accumulator, so both axes can be "parallel" (2-TC sharding on v7x).
            out_specs=pl.BlockSpec((8, td), lambda i, j: (i, j)),
        ),
        compiler_params=pltpu.CompilerParams(
            dimension_semantics=("parallel", "parallel"),
            vmem_limit_bytes=_VMEM_LIMIT,
        ),
    )(x2d, t2d)

    # Tiny epilogue: apply the per-feature weights once and take the mean.
    col_sums = jnp.sum(partials, axis=0)                       # (D,) f32
    return jnp.dot(col_sums, w) * jnp.float32(1.0 / float(n_total))


def weighted_mse_loss(x, t, w):
    """General N-D inputs; weights broadcast over the last (feature) axis,
    matching the PyTorch module's `diff * self.weights` for per-feature buffers."""
    # TODO(synk): weight shapes that broadcast over other axes are not handled.
    D = x.shape[-1]
    return weighted_mse_loss_2d(x.reshape(-1, D), t.reshape(-1, D), w)


if __name__ == "__main__":
    key = jax.random.PRNGKey(0)
    k1, k2, k3, k4, k5, k6 = jax.random.split(key, 6)

    # 1) Small shapes consistent with the module: batch=4, seq=16, hidden=128.
    B, S, H = 4, 16, 128
    x = jax.random.normal(k1, (B, S, H), dtype=jnp.float32)
    t = jax.random.normal(k2, (B, S, H), dtype=jnp.float32)
    w = jnp.linspace(0.5, 1.5, H, dtype=jnp.float32)   # registered-buffer weights
    loss = jax.block_until_ready(weighted_mse_loss(x, t, w))
    ref = jnp.mean(((x - t) ** 2) * w)
    assert jnp.allclose(loss, ref, rtol=1e-5, atol=1e-6), (loss, ref)

    # 2) Ragged rows (M=100), non-128 feature dim (D=96), bf16 inputs:
    #    exercises the un-padded full-D block, in-kernel row mask and upcast.
    M2, D2 = 100, 96
    xb = jax.random.normal(k3, (M2, D2), dtype=jnp.float32).astype(jnp.bfloat16)
    tb = jax.random.normal(k4, (M2, D2), dtype=jnp.float32).astype(jnp.bfloat16)
    w2 = jnp.linspace(0.25, 2.0, D2, dtype=jnp.float32)
    loss2 = jax.block_until_ready(weighted_mse_loss(xb, tb, w2))
    ref2 = jnp.mean((xb.astype(jnp.float32) - tb.astype(jnp.float32)) ** 2 * w2)
    assert jnp.allclose(loss2, ref2, rtol=1e-5, atol=1e-6), (loss2, ref2)

    # 3) Exercise the 2-D grid fallback (feature-axis tiling with a ragged D
    #    tail) by forcing a small lane block.
    M3, D3 = 37, 200
    x3 = jax.random.normal(k5, (M3, D3), dtype=jnp.float32)
    t3 = jax.random.normal(k6, (M3, D3), dtype=jnp.float32)
    w3 = jnp.linspace(0.1, 1.0, D3, dtype=jnp.float32)
    loss3 = jax.block_until_ready(weighted_mse_loss_2d(x3, t3, w3, max_lane_block=128))
    ref3 = jnp.mean(((x3 - t3) ** 2) * w3)
    assert jnp.allclose(loss3, ref3, rtol=1e-5, atol=1e-6), (loss3, ref3)

    print("KERNEL_OK")
</pallas_src>

<mosaic_0001>
module attributes {stable_mosaic.version = 11 : i64} {
  func.func @_wmse_partial_kernel(%arg0: i32, %arg1: i32, %arg2: memref<32x128xf32, #tpu.memory_space<vmem>>, %arg3: memref<32x128xf32, #tpu.memory_space<vmem>>, %arg4: memref<8x128xf32, #tpu.memory_space<vmem>>) attributes {dimension_semantics = [#tpu.dimension_semantics<parallel>, #tpu.dimension_semantics<parallel>], iteration_bounds = array<i64: 2, 1>, scalar_prefetch = 0 : i64, scratch_operands = 0 : i64, tpu.core_type = #tpu.core_type<tc>, window_params = [{transform_indices = @transform_0, window_bounds = array<i64: 32, 128>}, {transform_indices = @transform_1, window_bounds = array<i64: 32, 128>}, {transform_indices = @transform_2, window_bounds = array<i64: 8, 128>}]} {
    %cst = arith.constant 0.000000e+00 : f32
    %0 = vector.broadcast %cst : f32 to vector<8x128xf32>
    %c0_i32 = arith.constant 0 : i32
    %c32_i32 = arith.constant 32 : i32
    %1 = arith.muli %c0_i32, %c32_i32 : i32
    %2 = tpu.assume_multiple %1, 32 : i32
    %3 = arith.index_cast %2 : i32 to index
    %c0 = arith.constant 0 : index
    %4 = vector.load %arg2[%3, %c0] : memref<32x128xf32, #tpu.memory_space<vmem>>, vector<32x128xf32>
    %5 = arith.index_cast %2 : i32 to index
    %c0_0 = arith.constant 0 : index
    %6 = vector.load %arg3[%5, %c0_0] : memref<32x128xf32, #tpu.memory_space<vmem>>, vector<32x128xf32>
    %7 = arith.subf %4, %6 : vector<32x128xf32>
    %8 = arith.mulf %7, %7 : vector<32x128xf32>
    %9 = vector.shape_cast %8 : vector<32x128xf32> to vector<4x8x128xf32>
    %cst_1 = arith.constant dense<0.000000e+00> : vector<8x128xf32>
    %10 = vector.multi_reduction <add>, %9, %cst_1 [0] : vector<4x8x128xf32> to vector<8x128xf32>
    %11 = arith.addf %0, %10 : vector<8x128xf32>
    %c1_i32 = arith.constant 1 : i32
    %c0_2 = arith.constant 0 : index
    %c0_3 = arith.constant 0 : index
    %12 = vector.load %arg4[%c0_2, %c0_3] : memref<8x128xf32, #tpu.memory_space<vmem>>, vector<8x128xf32>
    tpu.vector_store %arg4[%c0_2, %c0_3], %11 {strides = array<i32>} : memref<8x128xf32, #tpu.memory_space<vmem>>, vector<8x128xf32>,
    return
  }
  func.func @transform_0(%arg0: i32, %arg1: i32) -> (i32, i32) {
    %c0_i32 = arith.constant 0 : i32
    return %arg0, %arg1 : i32, i32
  }
  func.func @transform_1(%arg0: i32, %arg1: i32) -> (i32, i32) {
    %c0_i32 = arith.constant 0 : i32
    return %arg0, %arg1 : i32, i32
  }
  func.func @transform_2(%arg0: i32, %arg1: i32) -> (i32, i32) {
    %c0_i32 = arith.constant 0 : i32
    return %arg0, %arg1 : i32, i32
  }
}

</mosaic_0001>

<bundles_post_ra>
// kernel: tpu_custom_call.1
= control target key start
LH: loop header
LB: loop body
LE: loop exit
PB: predicated region body
PF: predicated region fallthrough
CT: control target
= control target key end

     0   :  { %7 = vsyncpa [#allocation3], 0  ;;  %s785_s0 = inlined_call_operand.hbm [shape: f32[64,128], index: 0, kind: input, shape index: {}]   ;;  %s786_s1 = inlined_call_operand.hbm [shape: f32[64,128], index: 1, kind: input, shape index: {}]   ;;  %s787_s2 = inlined_call_operand.hbm [shape: f32[16,128], index: 2, kind: output, shape index: {}]  }
   0x1   :  { %9 = vsyncpa [#allocation3 + $0x1], 0 }
   0x2   :  { %10 = vsyncpa [#allocation6], 0 }
   0x3   :  { %12 = vsyncpa [#allocation6 + $0x1], 0 }
   0x4   :  { %13 = vsyncpa [#allocation4], 0 }
   0x5   :  { %15 = vsyncpa [#allocation4 + $0x1], 0  ;;  %s617_s9 = smov 0   ;;  %s619_s10 = smov 0  }
   0x6   :  { %s621_s11 = smov 0   ;;  %s623_s12 = smov 0  }
   0x7   :  { %s625_s13 = smov 0   ;;  %s627_s14 = smov 0  }
   0x8 LB: > { %s366_s15 = sadd.s32 4294967295, %s595_s14   ;;  %s367_s16 = sadd.s32 4294967294, %s595_s14   ;;  %s595_s14 = sphi %s627_s14, %s21_s14   ;;  %s591_s13 = sphi %s625_s13, %s799_s13   ;;  %s587_s12 = sphi %s623_s12, %s798_s12   ;;  %s583_s11 = sphi %s621_s11, %s797_s11   ;;  %s579_s10 = sphi %s619_s10, %s796_s10   ;;  %s575_s9 = sphi %s617_s9, %s795_s9  }
   0x9   : > { %s33_s17 = sadd.s32 1, %s591_s13  ;;  %s42_s18 = sadd.s32 1, %s583_s11 }
   0xa   : > { %p35_p0 = scmp.ge.s32.totalorder %s33_s17, 2  ;;  %p49_p1 = scmp.ne.s32.totalorder %s583_s11, %s579_s10 }
   0xb   : > { %p50_p2 = scmp.eq.s32.totalorder %s595_s14, 0  ;;  %p55_p3 = scmp.ne.s32.totalorder %s579_s10, %s575_s9 }
   0xc   : > { %s801_s17 = smov (%p35_p0, %s33_s17), 0  ;;  %p56_p5 = scmp.eq.s32.totalorder %s366_s15, 0 }
   0xd   : > { %p658_p4 = por %p50_p2, %p49_p1  ;;  %s37_s20 = ssub.s32 %s591_s13, %s801_s17 }
   0xe   : > { %p109_p6 = scmp.eq.s32.totalorder %s366_s15, 1  ;;  %p40_p7 = scmp.eq.s32.totalorder %s37_s20, 0 }
   0xf   : > { %p664_p8 = por %p56_p5, %p55_p3  ;;  %p115_p10 = scmp.eq.s32.totalorder %s367_s16, 1 }
  0x10   : > { %p668_p9 = por %p109_p6, %p49_p1  ;;  %p403_p13 = scmp.lt.s32.totalorder %s595_s14, 2 }
  0x11   : > { %s673_s23 = scalar_select %p40_p7, %s583_s11, %s42_s18  }
  0x12   : > { %p675_p11 = por %p115_p10, %p55_p3  ;;  %s682_s25 = sand.u32 1, %s583_s11  }
  0x13   : > { %s370_s26 = sshll.u32 %s682_s25, 5  ;;  %s384_s27 = sshll.u32 %s591_s13, 9 }
  0x14   : > { %s146_s30 = scalar_lea.hbm %s785_s0, %s384_s27  ;;  %s139_s3 = scalar_lea.vmem [#allocation2], %s370_s26 }
  0x15   : > { %s147_s4 = sshll.u32 %s139_s3, 4  ;;  %p695_p0 = pnand %p403_p13, %p658_p4  ;;  %s148_s4 = int_to_ptr.vmem [resolvable:$true] %s147_s4 }
  0x16   : > { %p376_p1 = scmp.ge.s32.totalorder %s595_s14, 1  ;;  %s136_s6 = scalar_lea.sflag [#allocation3], %s682_s25 }
  0x17   : > { %p457_p2 = pneg %p695_p0  ;;  %s468_s7 = scalar_lea.vmem %s148_s4, 512 }
  0x18   : > { %p469_p3 = scmp.ne.s32.totalorder %s148_s4, %s468_s7  ;;  %s597_s8 = smov [#allocation2]  }
  0x19   : > { %s473_s15 = sshll.u32 %s597_s8, 4  ;;  %s474_s15 = int_to_ptr.vmem [resolvable:$false] %s473_s15 }
  0x1a   : > { %p471_p5 = pnand %p469_p3, %p457_p2  ;;  %s475_s16 = scalar_lea.vmem %s474_s15, 1024 }
  0x1b   : > { %p476_p4 = scmp.lt.s32.totalorder %s148_s4, %s474_s15  ;;  %p477_p7 = scmp.lt.s32.totalorder %s475_s16, %s468_s7 }
  0x1c   : > { %p472_p6 = pneg %p471_p5 }
  0x1d   : > { %p478_p10 = por %p477_p7, %p476_p4 }
  0x1f   : > { %p479_p13 = pnand %p478_p10, %p472_p6 }
  0x21   : > { %482 = shalt.err (!%p479_p13)
}
  0x22   : > { %s598_s18 = smov 128   ;;  %s599_s19 = smov 8  }
  0x23   : > { %395 = dma.hbm_to_vmem [thread:$0]  (!%p695_p0), %s146_s30, 512, %s148_s4, %s136_s6, %s598_s18, %s598_s18, %s599_s19  }
  0x24   : > { %p177_p3 = scmp.lt.s32.totalorder %s595_s14, 3  ;;  %s168_s29 = scalar_lea.hbm %s786_s1, %s384_s27 }
  0x25   : > { %s161_s7 = scalar_lea.vmem [#allocation5], %s370_s26  ;;  %s158_s15 = scalar_lea.sflag [#allocation6], %s682_s25 }
  0x26   : > { %p716_p5 = pnand %p376_p1, %p177_p3  ;;  %s169_s8 = sshll.u32 %s161_s7, 4  ;;  %s170_s8 = int_to_ptr.vmem [resolvable:$true] %s169_s8 }
  0x27   : > { %s496_s16 = scalar_lea.vmem %s170_s8, 512  ;;  %s600_s30 = smov [#allocation5]  }
  0x28   : > { %p497_p6 = scmp.ne.s32.totalorder %s170_s8, %s496_s16  ;;  %s501_s4 = sshll.u32 %s600_s30, 4  ;;  %s502_s4 = int_to_ptr.vmem [resolvable:$false] %s501_s4 }
  0x29   : > { %s503_s27 = scalar_lea.vmem %s502_s4, 1024  ;;  %p504_p10 = scmp.lt.s32.totalorder %s170_s8, %s502_s4 }
  0x2a   : > { %p499_p4 = pnand %p497_p6, %p457_p2  ;;  %p505_p1 = scmp.lt.s32.totalorder %s503_s27, %s496_s16 }
  0x2c   : > { %p500_p7 = pneg %p499_p4  ;;  %p506_p13 = por %p505_p1, %p504_p10 }
  0x2e   : > { %p507_p3 = pnand %p506_p13, %p500_p7 }
  0x30   : > { %510 = shalt.err (!%p507_p3)
}
  0x31   : > { %398 = dma.hbm_to_vmem [thread:$0]  (!%p695_p0), %s168_s29, 512, %s170_s8, %s158_s15, %s598_s18, %s598_s18, %s599_s19  }
  0x32   : > { %181 = sbr.rel (%p716_p5) target bundleno = 84 (0x54), region = 28  ;;  %s731_s25 = sand.u32 (!%p716_p5), 1, %s579_s10  }
  0x33   : > { %s377_s26 = sshll.u32 (!%p716_p5), %s731_s25, 5  ;;  %s184_s6 = scalar_lea.sflag (!%p716_p5), [#allocation3], %s731_s25 }
  0x34   : > { %s187_s20 = scalar_lea.vmem (!%p716_p5), [#allocation2], %s377_s26 }
  0x37   : > { %562 = dma.done.wait (%p664_p8), %s184_s6, 512  }
  0x38   : > { %564 = vsyncadd (%p664_p8), %s184_s6, 4294966784  ;;  %s193_s5 = scalar_lea.sflag [#allocation6], %s731_s25  ;;  %s196_s18 = scalar_lea.vmem [#allocation5], %s377_s26 }
  0x39   : > { %566 = dma.done.wait (%p664_p8), %s193_s5, 512  }
  0x3a   : > { %568 = vsyncadd (%p664_p8), %s193_s5, 4294966784  ;;  %v224_v0 = vld [vmem:[%s187_s20] sm:$0xff]  ;;  %v225_v1 = vld [vmem:[%s187_s20 + $0x8] sm:$0xff]  ;;  %s379_s19 = sshll.u32 %s731_s25, 3  ;;  %s381_s29 = sshll.u32 %s587_s12, 7 }
  0x3b   : > { %v226_v2 = vld [vmem:[%s187_s20 + $0x10] sm:$0xff]  ;;  %v227_v3 = vld [vmem:[%s187_s20 + $0x18] sm:$0xff]  ;;  %v228_v4 = vld [vmem:[%s196_s18] sm:$0xff]  ;;  %s221_s21 = scalar_lea.vmem [#allocation7], %s379_s19  ;;  %s258_s8 = scalar_lea.hbm %s787_s2, %s381_s29 }
  0x3c   : > { %v229_v5 = vld [vmem:[%s196_s18 + $0x8] sm:$0xff]  ;;  %v230_v6 = vld [vmem:[%s196_s18 + $0x10] sm:$0xff]  ;;  %v231_v7 = vld [vmem:[%s196_s18 + $0x18] sm:$0xff]  ;;  %v232_v8 = vsub.f32 %v224_v0, %v228_v4  ;;  %s260_s28 = sshll.u32 %s221_s21, 4  ;;  %s246_s15 = scalar_lea.sflag [#allocation4], %s731_s25  ;;  %s261_s28 = int_to_ptr.vmem [resolvable:$true] %s260_s28 }
  0x3d   : > { %v233_v9 = vsub.f32 %v225_v1, %v229_v5  ;;  %v234_v10 = vsub.f32 %v226_v2, %v230_v6  ;;  %v235_v11 = vsub.f32 %v227_v3, %v231_v7  ;;  %s511_s16 = scalar_lea.vmem %s261_s28, 128  ;;  %s601_s30 = smov [#allocation7]  }
  0x3e   : > { %v236_v12 = vmul.f32 %v232_v8, %v232_v8  ;;  %p512_p8 = scmp.ne.s32.totalorder %s261_s28, %s511_s16  ;;  %s515_s4 = sshll.u32 %s601_s30, 4  ;;  %s516_s4 = int_to_ptr.vmem [resolvable:$false] %s515_s4 }
  0x3f   : > { %v237_v13 = vmul.f32 %v233_v9, %v233_v9  ;;  %v238_v14 = vmul.f32 %v234_v10, %v234_v10  ;;  %v239_v15 = vmul.f32 %v235_v11, %v235_v11  ;;  %s517_s27 = scalar_lea.vmem %s516_s4, 256  ;;  %p518_p5 = scmp.lt.s32.totalorder %s261_s28, %s516_s4 }
  0x40   : > { %p513_p0 = pnand %p512_p8, %p668_p9  ;;  %p519_p6 = scmp.lt.s32.totalorder %s517_s27, %s511_s16 }
  0x41   : > { %v240_v16 = vadd.f32 %v237_v13, %v236_v12 }
  0x42   : > { %p514_p2 = pneg %p513_p0  ;;  %p520_p4 = por %p519_p6, %p518_p5 }
  0x43   : > { %v241_v17 = vadd.f32 %v240_v16, %v238_v14 }
  0x44   : > { %p521_p7 = pnand %p520_p4, %p514_p2 }
  0x45   : > { %v242_v18 = vadd.f32 %v241_v17, %v239_v15 }
  0x47   : > { %244 = vst [vmem:[%s221_s21] sm:$0xff] %v242_v18 }
  0x48   : > { %524 = shalt.err (!%p521_p7)
}
  0x49   : > { %s525_s12 = scalar_lea.hbm %s258_s8, 128  ;;  %s529_s6 = scalar_lea.hbm %s787_s2, 256 }
  0x4a   : > { %p526_p10 = scmp.ne.s32.totalorder %s258_s8, %s525_s12  ;;  %p530_p3 = scmp.lt.s32.totalorder %s258_s8, %s787_s2 }
  0x4b   : > { %p531_p8 = scmp.lt.s32.totalorder %s529_s6, %s525_s12 }
  0x4c   : > { %p527_p1 = pnand %p526_p10, %p668_p9 }
  0x4d   : > { %p532_p0 = por %p531_p8, %p530_p3 }
  0x4e   : > { %p528_p13 = pneg %p527_p1 }
  0x50   : > { %p533_p12 = pnand %p532_p0, %p528_p13 }
  0x52   : > { %536 = shalt.err (!%p533_p12)
}
  0x53   : > { %390 = dma.vmem_to_hbm [thread:$0]  (%p668_p9), %s261_s28, 128, %s258_s8, %s246_s15  }
  0x54 PF: > { %s272_s18 = sand.u32 1, %s575_s9   ;;  %p794_p2 = scmp.ge.s32.totalorder %s595_s14, 2 }
  0x55   : > { %s273_s19 = scalar_lea.sflag [#allocation4], %s272_s18 }
  0x56   : > { %p400_p5 = pnand %p794_p2, %p675_p11 }
  0x58   : > { %p401_p6 = pneg %p400_p5 }
  0x5a   : > { %570 = dma.done.wait (%p401_p6), %s273_s19, 128  }
  0x5b   : > { %572 = vsyncadd (%p401_p6), %s273_s19, 4294967168  ;;  %s21_s14 = sadd.s32 1, %s595_s14   ;;  %s795_s9 = smov %s579_s10 }
  0x5c   : > { %p18_p4 = scmp.ge.s32.totalorder %s21_s14, 4   ;;  %s796_s10 = smov %s583_s11 }
  0x5d   : > { %s797_s11 = smov %s673_s23  ;;  %s798_s12 = smov %s591_s13 }
  0x5e   : > { %s799_s13 = smov %s801_s17  ;;  %20 = sbr.rel (!%p18_p4) target bundleno = 8 (0x8), region = 86 }
  0x63   :  { %278 = vsyncpa [#allocation3], 1 }
  0x64   :  { %280 = vsyncpa [#allocation3 + $0x1], 1 }
  0x65   :  { %281 = vsyncpa [#allocation6], 1 }
  0x66   :  { %283 = vsyncpa [#allocation6 + $0x1], 1 }
  0x67   :  { %284 = vsyncpa [#allocation4], 1 }
  0x68   :  { %286 = vsyncpa [#allocation4 + $0x1], 1 }

</bundles_post_ra>
